<compile_context>
chip_gen: v7x
topology: tpu7x:2x2x1
jax: 0.10.0
libtpu: 0.0.40
codegen_flags: <defaults>
</compile_context>

<pallas_src>
import functools

import jax
import jax.numpy as jnp
from jax.experimental import pallas as pl
from jax.experimental.pallas import tpu as pltpu


def _round8(x):
    return ((x + 7) // 8) * 8


def _pack_layout(obs_shape, hidden_dim, n_actions, hidden_layer):
    """Static row/column layout of the single packed parameter buffer."""
    F, H, A, L = obs_shape, hidden_dim, n_actions, hidden_layer
    G = 3 * H
    Wp = ((max(G, H, A) + 127) // 128) * 128          # lane-dense packed width
    H8 = _round8(H)
    o_enc = 0                                         # (F, H)   encoder weight
    o_ih = o_enc + _round8(F)                         # (H, 3H)  fused W_ih  (r|z|n)
    o_hh = o_ih + H8                                  # (H, 3H)  fused W_hh  (r|z|n)
    o_fc = o_hh + H8                                  # L blocks of (H, H)
    o_dec = o_fc + L * H8                             # (H, A)   decoder weight
    o_bias = o_dec + H8                               # bias rows: enc, ih, hh, fc0..fc{L-1}, dec
    rows = o_bias + _round8(4 + L)
    return dict(G=G, Wp=Wp, H8=H8, o_enc=o_enc, o_ih=o_ih, o_hh=o_hh,
                o_fc=o_fc, o_dec=o_dec, o_bias=o_bias, rows=rows)


def pack_params(params, obs_shape, hidden_dim, n_actions, hidden_layer):
    """One-time (init/update-time) packing: gate fusion + single contiguous f32 buffer."""
    F, H, A, L = obs_shape, hidden_dim, n_actions, hidden_layer
    lay = _pack_layout(F, H, A, L)
    G, Wp, H8 = lay["G"], lay["Wp"], lay["H8"]

    # Fuse GRU gate weights/biases along the output dim: (3,H,H)->(H,3H), (3,1,H)->(1,3H).
    w_ih_f = jnp.transpose(params["w_ih"], (1, 0, 2)).reshape(H, G)
    b_ih_f = jnp.transpose(params["b_ih"], (1, 0, 2)).reshape(1, G)
    w_hh_f = jnp.transpose(params["w_hh"], (1, 0, 2)).reshape(H, G)
    b_hh_f = jnp.transpose(params["b_hh"], (1, 0, 2)).reshape(1, G)

    P = jnp.zeros((lay["rows"], Wp), jnp.float32)

    def put(buf, row, block):
        r, c = block.shape
        return buf.at[row:row + r, 0:c].set(block)

    P = put(P, lay["o_enc"], params["w_enc"])
    P = put(P, lay["o_ih"], w_ih_f)
    P = put(P, lay["o_hh"], w_hh_f)
    for i in range(L):
        P = put(P, lay["o_fc"] + i * H8, params["w_fc"][i])
    P = put(P, lay["o_dec"], params["w_dec"])
    ob = lay["o_bias"]
    P = put(P, ob + 0, params["b_enc"])
    P = put(P, ob + 1, b_ih_f)
    P = put(P, ob + 2, b_hh_f)
    for i in range(L):
        P = put(P, ob + 3 + i, params["b_fc"][i])
    P = put(P, ob + 3 + L, params["b_dec"])
    return P


def _dnn_agent_kernel(lay, bs, F, H, A, L,
                      lio_ref, obs_ref, p_ref,   # (bs,F), (bs,F), packed params
                      out_ref,                   # (bs, A)
                      xin_s):                    # VMEM scratch (2*bsp, F)
    G = 3 * H
    H8 = lay["H8"]
    bsp = _round8(bs)
    ob = lay["o_bias"]

    def wslab(row, nrows, ncols):
        return p_ref[row:row + nrows, 0:ncols]

    # --- Stack lio/obs inside the kernel; each half starts on an 8-sublane boundary ---
    if bsp != bs:
        xin_s[...] = jnp.zeros_like(xin_s)
    xin_s[0:bs, :] = lio_ref[...]
    xin_s[bsp:bsp + bs, :] = obs_ref[...]
    xin = xin_s[...]                                               # (2*bsp, F)

    # --- Shared-weight encoder: one matmul for both lio and obs ---
    w_enc = wslab(lay["o_enc"], F, H)
    b_enc = wslab(ob + 0, 1, H)
    enc = jax.nn.relu(jnp.dot(xin, w_enc, preferred_element_type=jnp.float32) + b_enc)

    # --- Input-side GRU gates for BOTH cells in one fused matmul -> (2*bsp, 3H) ---
    w_ih = wslab(lay["o_ih"], H, G)
    b_ih = wslab(ob + 1, 1, G)
    gi = jnp.dot(enc, w_ih, preferred_element_type=jnp.float32) + b_ih
    l_gi = gi[0:bsp]            # gates for l = relu(encode(lio))   (first cell input)
    x_gi = gi[bsp:2 * bsp]      # gates for x = relu(encode(obs))   (second cell input)

    b_hh = wslab(ob + 2, 1, G)  # (1, 3H)

    # --- First GRUCell with h0 == 0: W_hh @ 0 + b_hh == b_hh ; h' = (1-z)*n ---
    rz1 = jax.nn.sigmoid(l_gi[:, 0:2 * H] + b_hh[:, 0:2 * H])      # fused r|z sigmoid
    r1 = rz1[:, 0:H]
    z1 = rz1[:, H:2 * H]
    n1 = jnp.tanh(l_gi[:, 2 * H:3 * H] + r1 * b_hh[:, 2 * H:3 * H])
    h = jax.nn.relu((1.0 - z1) * n1)

    # --- Second GRUCell: single fused hidden-side matmul ---
    w_hh = wslab(lay["o_hh"], H, G)
    gh = jnp.dot(h, w_hh, preferred_element_type=jnp.float32) + b_hh
    rz2 = jax.nn.sigmoid(x_gi[:, 0:2 * H] + gh[:, 0:2 * H])        # fused r|z sigmoid
    r2 = rz2[:, 0:H]
    z2 = rz2[:, H:2 * H]
    n2 = jnp.tanh(x_gi[:, 2 * H:3 * H] + r2 * gh[:, 2 * H:3 * H])
    x = jax.nn.relu((1.0 - z2) * n2 + z2 * h)

    # --- Hidden MLP stack (static unroll) ---
    for i in range(L):
        w_fc = wslab(lay["o_fc"] + i * H8, H, H)
        b_fc = wslab(ob + 3 + i, 1, H)
        x = jax.nn.relu(jnp.dot(x, w_fc, preferred_element_type=jnp.float32) + b_fc)

    # --- Decode + tanh; drop the padded rows on store ---
    w_dec = wslab(lay["o_dec"], H, A)
    b_dec = wslab(ob + 3 + L, 1, A)
    out = jnp.tanh(jnp.dot(x, w_dec, preferred_element_type=jnp.float32) + b_dec)
    out_ref[...] = out[0:bs]


def dnn_agent_forward(lio, obs, packed, *, obs_shape, hidden_dim, n_actions, hidden_layer):
    """Hot-path wrapper: no XLA ops, just the pallas_call (3 VMEM inputs total)."""
    bs = lio.shape[0]
    bsp = _round8(bs)
    lay = _pack_layout(obs_shape, hidden_dim, n_actions, hidden_layer)
    vmem = pl.BlockSpec(memory_space=pltpu.MemorySpace.VMEM)
    kernel = functools.partial(_dnn_agent_kernel, lay, bs, obs_shape,
                               hidden_dim, n_actions, hidden_layer)
    # Whole problem is far below VMEM capacity on v5e/v6e/v7x -> no grid, everything resident.
    # For large batches: grid=(cdiv(B,128),) over rows with constant-index weight BlockSpecs and
    # dimension_semantics=("parallel",) (shards batch tiles across v7x's 2 TensorCores).
    return pl.pallas_call(
        kernel,
        out_shape=jax.ShapeDtypeStruct((bs, n_actions), jnp.float32),
        in_specs=[vmem, vmem, vmem],
        out_specs=vmem,
        scratch_shapes=[pltpu.VMEM((2 * bsp, obs_shape), jnp.float32)],
    )(lio, obs, packed)


def init_params(key, obs_shape, hidden_dim, n_actions, hidden_layer):
    """Deterministic synthetic init (uniform +-1/sqrt(fan_in), like PyTorch defaults)."""
    def uni(k, shape, fan_in):
        bound = 1.0 / jnp.sqrt(jnp.float32(fan_in))
        return jax.random.uniform(k, shape, jnp.float32, -bound, bound)

    ks = jax.random.split(key, 12)
    params = {
        # encode: Linear(obs_shape -> hidden_dim), stored (in, out)
        "w_enc": uni(ks[0], (obs_shape, hidden_dim), obs_shape),
        "b_enc": uni(ks[1], (1, hidden_dim), obs_shape),
        # GRUCell(hidden_dim, hidden_dim): gates stacked (3, in, out) in r,z,n order
        "w_ih": uni(ks[2], (3, hidden_dim, hidden_dim), hidden_dim),
        "b_ih": uni(ks[3], (3, 1, hidden_dim), hidden_dim),
        "w_hh": uni(ks[4], (3, hidden_dim, hidden_dim), hidden_dim),
        "b_hh": uni(ks[5], (3, 1, hidden_dim), hidden_dim),
        # fc0..fc{L-1}: stacked (L, hidden, hidden)
        "w_fc": uni(ks[6], (max(hidden_layer, 1), hidden_dim, hidden_dim), hidden_dim),
        "b_fc": uni(ks[7], (max(hidden_layer, 1), 1, hidden_dim), hidden_dim),
        # decode: Linear(hidden_dim -> n_actions)
        "w_dec": uni(ks[8], (hidden_dim, n_actions), hidden_dim),
        "b_dec": uni(ks[9], (1, n_actions), hidden_dim),
    }
    return params


def reference_forward(lio, obs, params, hidden_layer):
    """Pure-JAX reference mirroring the PyTorch forward (unfused layout)."""
    def linear(x, w, b):
        return x @ w + b

    def gru(x, h):
        r = jax.nn.sigmoid(linear(x, params["w_ih"][0], params["b_ih"][0])
                           + linear(h, params["w_hh"][0], params["b_hh"][0]))
        z = jax.nn.sigmoid(linear(x, params["w_ih"][1], params["b_ih"][1])
                           + linear(h, params["w_hh"][1], params["b_hh"][1]))
        n = jnp.tanh(linear(x, params["w_ih"][2], params["b_ih"][2])
                     + r * linear(h, params["w_hh"][2], params["b_hh"][2]))
        return (1.0 - z) * n + z * h

    l = jax.nn.relu(linear(lio, params["w_enc"], params["b_enc"]))
    h = jax.nn.relu(gru(l, jnp.zeros_like(l)))
    x = jax.nn.relu(linear(obs, params["w_enc"], params["b_enc"]))
    x = jax.nn.relu(gru(x, h))
    for i in range(hidden_layer):
        x = jax.nn.relu(linear(x, params["w_fc"][i], params["b_fc"][i]))
    return jnp.tanh(linear(x, params["w_dec"], params["b_dec"]))


if __name__ == "__main__":
    # Small shapes implied by the module's forward: lio/obs are (batch, obs_shape).
    batch = 4
    obs_shape = 16
    hidden_dim = 32
    n_actions = 8
    hidden_layer = 2

    key = jax.random.PRNGKey(0)
    k_lio, k_obs, k_params = jax.random.split(key, 3)
    lio = jax.random.normal(k_lio, (batch, obs_shape), jnp.float32)
    obs = jax.random.normal(k_obs, (batch, obs_shape), jnp.float32)
    params = init_params(k_params, obs_shape, hidden_dim, n_actions, hidden_layer)

    # One-time packing (parameter "update time"), outside the per-call hot path.
    packed = pack_params(params, obs_shape, hidden_dim, n_actions, hidden_layer)
    packed = jax.block_until_ready(packed)

    out = dnn_agent_forward(lio, obs, packed,
                            obs_shape=obs_shape, hidden_dim=hidden_dim,
                            n_actions=n_actions, hidden_layer=hidden_layer)
    out = jax.block_until_ready(out)

    ref = reference_forward(lio, obs, params, hidden_layer)
    assert out.shape == (batch, n_actions)
    assert jnp.allclose(out, ref, atol=1e-5, rtol=1e-5), "mismatch vs JAX reference"

    print("KERNEL_OK")
</pallas_src>

<mosaic_0001>
module attributes {stable_mosaic.version = 11 : i64} {
  func.func @_dnn_agent_kernel(%arg0: memref<4x16xf32, #tpu.memory_space<vmem>>, %arg1: memref<4x16xf32, #tpu.memory_space<vmem>>, %arg2: memref<184x128xf32, #tpu.memory_space<vmem>>, %arg3: memref<4x8xf32, #tpu.memory_space<vmem>>, %arg4: memref<16x16xf32, #tpu.memory_space<vmem>>) attributes {dimension_semantics = [], scalar_prefetch = 0 : i64, scratch_operands = 1 : i64, tpu.core_type = #tpu.core_type<tc>} {
    %cst = arith.constant 0.000000e+00 : f32
    %0 = vector.broadcast %cst : f32 to vector<16x16xf32>
    %c0 = arith.constant 0 : index
    %c0_0 = arith.constant 0 : index
    %1 = vector.load %arg4[%c0, %c0_0] : memref<16x16xf32, #tpu.memory_space<vmem>>, vector<16x16xf32>
    tpu.vector_store %arg4[%c0, %c0_0], %0 {strides = array<i32>} : memref<16x16xf32, #tpu.memory_space<vmem>>, vector<16x16xf32>,
    %c0_1 = arith.constant 0 : index
    %c0_2 = arith.constant 0 : index
    %2 = vector.load %arg0[%c0_1, %c0_2] : memref<4x16xf32, #tpu.memory_space<vmem>>, vector<4x16xf32>
    %c0_3 = arith.constant 0 : index
    %c0_4 = arith.constant 0 : index
    %3 = vector.load %arg4[%c0_3, %c0_4] : memref<16x16xf32, #tpu.memory_space<vmem>>, vector<4x16xf32>
    tpu.vector_store %arg4[%c0_3, %c0_4], %2 {strides = array<i32>} : memref<16x16xf32, #tpu.memory_space<vmem>>, vector<4x16xf32>,
    %c0_5 = arith.constant 0 : index
    %c0_6 = arith.constant 0 : index
    %4 = vector.load %arg1[%c0_5, %c0_6] : memref<4x16xf32, #tpu.memory_space<vmem>>, vector<4x16xf32>
    %c8 = arith.constant 8 : index
    %c0_7 = arith.constant 0 : index
    %5 = vector.load %arg4[%c8, %c0_7] : memref<16x16xf32, #tpu.memory_space<vmem>>, vector<4x16xf32>
    tpu.vector_store %arg4[%c8, %c0_7], %4 {strides = array<i32>} : memref<16x16xf32, #tpu.memory_space<vmem>>, vector<4x16xf32>,
    %c0_8 = arith.constant 0 : index
    %c0_9 = arith.constant 0 : index
    %6 = vector.load %arg4[%c0_8, %c0_9] : memref<16x16xf32, #tpu.memory_space<vmem>>, vector<16x16xf32>
    %c0_10 = arith.constant 0 : index
    %c0_11 = arith.constant 0 : index
    %7 = vector.load %arg2[%c0_10, %c0_11] : memref<184x128xf32, #tpu.memory_space<vmem>>, vector<16x32xf32>
    %c176 = arith.constant 176 : index
    %c0_12 = arith.constant 0 : index
    %8 = vector.load %arg2[%c176, %c0_12] : memref<184x128xf32, #tpu.memory_space<vmem>>, vector<1x32xf32>
    %cst_13 = arith.constant dense<0.000000e+00> : vector<16x32xf32>
    %9 = tpu.matmul %6, %7, %cst_13 {dimension_numbers = #tpu.dot_dimension_numbers<[1], [0], [0], [1], [0, 0, 1, 1], [], []>} : vector<16x16xf32>, vector<16x32xf32>, vector<16x32xf32> -> vector<16x32xf32>
    %10 = vector.broadcast %8 : vector<1x32xf32> to vector<16x32xf32>
    %11 = arith.addf %9, %10 : vector<16x32xf32>
    %cst_14 = arith.constant 0.000000e+00 : f32
    %12 = vector.broadcast %cst_14 : f32 to vector<16x32xf32>
    %13 = arith.maximumf %11, %12 : vector<16x32xf32>
    %c16 = arith.constant 16 : index
    %c0_15 = arith.constant 0 : index
    %14 = vector.load %arg2[%c16, %c0_15] : memref<184x128xf32, #tpu.memory_space<vmem>>, vector<32x96xf32>
    %c177 = arith.constant 177 : index
    %c0_16 = arith.constant 0 : index
    %15 = vector.load %arg2[%c177, %c0_16] : memref<184x128xf32, #tpu.memory_space<vmem>>, vector<1x96xf32>
    %cst_17 = arith.constant dense<0.000000e+00> : vector<16x96xf32>
    %16 = tpu.matmul %13, %14, %cst_17 {dimension_numbers = #tpu.dot_dimension_numbers<[1], [0], [0], [1], [0, 0, 1, 1], [], []>} : vector<16x32xf32>, vector<32x96xf32>, vector<16x96xf32> -> vector<16x96xf32>
    %17 = vector.broadcast %15 : vector<1x96xf32> to vector<16x96xf32>
    %18 = arith.addf %16, %17 : vector<16x96xf32>
    %19 = vector.extract_strided_slice %18 {offsets = [0, 0], sizes = [8, 96], strides = [1, 1]} : vector<16x96xf32> to vector<8x96xf32>
    %20 = vector.extract_strided_slice %18 {offsets = [8, 0], sizes = [8, 96], strides = [1, 1]} : vector<16x96xf32> to vector<8x96xf32>
    %c178 = arith.constant 178 : index
    %c0_18 = arith.constant 0 : index
    %21 = vector.load %arg2[%c178, %c0_18] : memref<184x128xf32, #tpu.memory_space<vmem>>, vector<1x96xf32>
    %22 = vector.extract_strided_slice %19 {offsets = [0, 0], sizes = [8, 64], strides = [1, 1]} : vector<8x96xf32> to vector<8x64xf32>
    %23 = vector.extract_strided_slice %21 {offsets = [0, 0], sizes = [1, 64], strides = [1, 1]} : vector<1x96xf32> to vector<1x64xf32>
    %24 = vector.broadcast %23 : vector<1x64xf32> to vector<8x64xf32>
    %25 = arith.addf %22, %24 : vector<8x64xf32>
    %26 = arith.negf %25 : vector<8x64xf32>
    %27 = math.exp %26 : vector<8x64xf32>
    %cst_19 = arith.constant 1.000000e+00 : f32
    %28 = vector.broadcast %cst_19 : f32 to vector<8x64xf32>
    %29 = arith.addf %28, %27 : vector<8x64xf32>
    %30 = arith.divf %28, %29 : vector<8x64xf32>
    %31 = vector.extract_strided_slice %30 {offsets = [0, 0], sizes = [8, 32], strides = [1, 1]} : vector<8x64xf32> to vector<8x32xf32>
    %32 = vector.extract_strided_slice %30 {offsets = [0, 32], sizes = [8, 32], strides = [1, 1]} : vector<8x64xf32> to vector<8x32xf32>
    %33 = vector.extract_strided_slice %19 {offsets = [0, 64], sizes = [8, 32], strides = [1, 1]} : vector<8x96xf32> to vector<8x32xf32>
    %34 = vector.extract_strided_slice %21 {offsets = [0, 64], sizes = [1, 32], strides = [1, 1]} : vector<1x96xf32> to vector<1x32xf32>
    %35 = vector.broadcast %34 : vector<1x32xf32> to vector<8x32xf32>
    %36 = arith.mulf %31, %35 : vector<8x32xf32>
    %37 = arith.addf %33, %36 : vector<8x32xf32>
    %38 = math.tanh %37 : vector<8x32xf32>
    %cst_20 = arith.constant 1.000000e+00 : f32
    %39 = vector.broadcast %cst_20 : f32 to vector<8x32xf32>
    %40 = arith.subf %39, %32 : vector<8x32xf32>
    %41 = arith.mulf %40, %38 : vector<8x32xf32>
    %cst_21 = arith.constant 0.000000e+00 : f32
    %42 = vector.broadcast %cst_21 : f32 to vector<8x32xf32>
    %43 = arith.maximumf %41, %42 : vector<8x32xf32>
    %c48 = arith.constant 48 : index
    %c0_22 = arith.constant 0 : index
    %44 = vector.load %arg2[%c48, %c0_22] : memref<184x128xf32, #tpu.memory_space<vmem>>, vector<32x96xf32>
    %cst_23 = arith.constant dense<0.000000e+00> : vector<8x96xf32>
    %45 = tpu.matmul %43, %44, %cst_23 {dimension_numbers = #tpu.dot_dimension_numbers<[1], [0], [0], [1], [0, 0, 1, 1], [], []>} : vector<8x32xf32>, vector<32x96xf32>, vector<8x96xf32> -> vector<8x96xf32>
    %46 = vector.broadcast %21 : vector<1x96xf32> to vector<8x96xf32>
    %47 = arith.addf %45, %46 : vector<8x96xf32>
    %48 = vector.extract_strided_slice %20 {offsets = [0, 0], sizes = [8, 64], strides = [1, 1]} : vector<8x96xf32> to vector<8x64xf32>
    %49 = vector.extract_strided_slice %47 {offsets = [0, 0], sizes = [8, 64], strides = [1, 1]} : vector<8x96xf32> to vector<8x64xf32>
    %50 = arith.addf %48, %49 : vector<8x64xf32>
    %51 = arith.negf %50 : vector<8x64xf32>
    %52 = math.exp %51 : vector<8x64xf32>
    %cst_24 = arith.constant 1.000000e+00 : f32
    %53 = vector.broadcast %cst_24 : f32 to vector<8x64xf32>
    %54 = arith.addf %53, %52 : vector<8x64xf32>
    %55 = arith.divf %53, %54 : vector<8x64xf32>
    %56 = vector.extract_strided_slice %55 {offsets = [0, 0], sizes = [8, 32], strides = [1, 1]} : vector<8x64xf32> to vector<8x32xf32>
    %57 = vector.extract_strided_slice %55 {offsets = [0, 32], sizes = [8, 32], strides = [1, 1]} : vector<8x64xf32> to vector<8x32xf32>
    %58 = vector.extract_strided_slice %20 {offsets = [0, 64], sizes = [8, 32], strides = [1, 1]} : vector<8x96xf32> to vector<8x32xf32>
    %59 = vector.extract_strided_slice %47 {offsets = [0, 64], sizes = [8, 32], strides = [1, 1]} : vector<8x96xf32> to vector<8x32xf32>
    %60 = arith.mulf %56, %59 : vector<8x32xf32>
    %61 = arith.addf %58, %60 : vector<8x32xf32>
    %62 = math.tanh %61 : vector<8x32xf32>
    %cst_25 = arith.constant 1.000000e+00 : f32
    %63 = vector.broadcast %cst_25 : f32 to vector<8x32xf32>
    %64 = arith.subf %63, %57 : vector<8x32xf32>
    %65 = arith.mulf %64, %62 : vector<8x32xf32>
    %66 = arith.mulf %57, %43 : vector<8x32xf32>
    %67 = arith.addf %65, %66 : vector<8x32xf32>
    %cst_26 = arith.constant 0.000000e+00 : f32
    %68 = vector.broadcast %cst_26 : f32 to vector<8x32xf32>
    %69 = arith.maximumf %67, %68 : vector<8x32xf32>
    %c80 = arith.constant 80 : index
    %c0_27 = arith.constant 0 : index
    %70 = vector.load %arg2[%c80, %c0_27] : memref<184x128xf32, #tpu.memory_space<vmem>>, vector<32x32xf32>
    %c179 = arith.constant 179 : index
    %c0_28 = arith.constant 0 : index
    %71 = vector.load %arg2[%c179, %c0_28] : memref<184x128xf32, #tpu.memory_space<vmem>>, vector<1x32xf32>
    %cst_29 = arith.constant dense<0.000000e+00> : vector<8x32xf32>
    %72 = tpu.matmul %69, %70, %cst_29 {dimension_numbers = #tpu.dot_dimension_numbers<[1], [0], [0], [1], [0, 0, 1, 1], [], []>} : vector<8x32xf32>, vector<32x32xf32>, vector<8x32xf32> -> vector<8x32xf32>
    %73 = vector.broadcast %71 : vector<1x32xf32> to vector<8x32xf32>
    %74 = arith.addf %72, %73 : vector<8x32xf32>
    %cst_30 = arith.constant 0.000000e+00 : f32
    %75 = vector.broadcast %cst_30 : f32 to vector<8x32xf32>
    %76 = arith.maximumf %74, %75 : vector<8x32xf32>
    %c112 = arith.constant 112 : index
    %c0_31 = arith.constant 0 : index
    %77 = vector.load %arg2[%c112, %c0_31] : memref<184x128xf32, #tpu.memory_space<vmem>>, vector<32x32xf32>
    %c180 = arith.constant 180 : index
    %c0_32 = arith.constant 0 : index
    %78 = vector.load %arg2[%c180, %c0_32] : memref<184x128xf32, #tpu.memory_space<vmem>>, vector<1x32xf32>
    %cst_33 = arith.constant dense<0.000000e+00> : vector<8x32xf32>
    %79 = tpu.matmul %76, %77, %cst_33 {dimension_numbers = #tpu.dot_dimension_numbers<[1], [0], [0], [1], [0, 0, 1, 1], [], []>} : vector<8x32xf32>, vector<32x32xf32>, vector<8x32xf32> -> vector<8x32xf32>
    %80 = vector.broadcast %78 : vector<1x32xf32> to vector<8x32xf32>
    %81 = arith.addf %79, %80 : vector<8x32xf32>
    %cst_34 = arith.constant 0.000000e+00 : f32
    %82 = vector.broadcast %cst_34 : f32 to vector<8x32xf32>
    %83 = arith.maximumf %81, %82 : vector<8x32xf32>
    %c144 = arith.constant 144 : index
    %c0_35 = arith.constant 0 : index
    %84 = vector.load %arg2[%c144, %c0_35] : memref<184x128xf32, #tpu.memory_space<vmem>>, vector<32x8xf32>
    %c181 = arith.constant 181 : index
    %c0_36 = arith.constant 0 : index
    %85 = vector.load %arg2[%c181, %c0_36] : memref<184x128xf32, #tpu.memory_space<vmem>>, vector<1x8xf32>
    %cst_37 = arith.constant dense<0.000000e+00> : vector<8x8xf32>
    %86 = tpu.matmul %83, %84, %cst_37 {dimension_numbers = #tpu.dot_dimension_numbers<[1], [0], [0], [1], [0, 0, 1, 1], [], []>} : vector<8x32xf32>, vector<32x8xf32>, vector<8x8xf32> -> vector<8x8xf32>
    %87 = vector.broadcast %85 : vector<1x8xf32> to vector<8x8xf32>
    %88 = arith.addf %86, %87 : vector<8x8xf32>
    %89 = math.tanh %88 : vector<8x8xf32>
    %90 = vector.extract_strided_slice %89 {offsets = [0, 0], sizes = [4, 8], strides = [1, 1]} : vector<8x8xf32> to vector<4x8xf32>
    %c0_38 = arith.constant 0 : index
    %c0_39 = arith.constant 0 : index
    %91 = vector.load %arg3[%c0_38, %c0_39] : memref<4x8xf32, #tpu.memory_space<vmem>>, vector<4x8xf32>
    tpu.vector_store %arg3[%c0_38, %c0_39], %90 {strides = array<i32>} : memref<4x8xf32, #tpu.memory_space<vmem>>, vector<4x8xf32>,
    return
  }
}

</mosaic_0001>

<bundles_post_ra>
// kernel: tpu_custom_call.1
= control target key start
LH: loop header
LB: loop body
LE: loop exit
PB: predicated region body
PF: predicated region fallthrough
CT: control target
= control target key end

     0   :  { %8 = vsyncpa [#allocation4], 0  ;;  %s1026_s0 = inlined_call_operand.hbm [shape: f32[4,16], index: 0, kind: input, shape index: {}]   ;;  %s1027_s1 = inlined_call_operand.hbm [shape: f32[4,16], index: 1, kind: input, shape index: {}]   ;;  %s1028_s2 = inlined_call_operand.hbm [shape: f32[184,128], index: 2, kind: input, shape index: {}]   ;;  %s1029_s3 = inlined_call_operand.hbm [shape: f32[4,8], index: 3, kind: output, shape index: {}]  }
   0x1   :  { %9 = vsyncpa [#allocation7], 0 }
   0x2   :  { %10 = vsyncpa [#allocation5], 0  ;;  %s911_s12 = smov [#allocation6]   ;;  %s912_s14 = smov [#allocation3]  }
   0x3   :  { %s27_s13 = sshll.u32 %s911_s12, 4  ;;  %s17_s15 = sshll.u32 %s912_s14, 4  ;;  %s28_s13 = int_to_ptr.vmem [resolvable:$true] %s27_s13  ;;  %s18_s15 = int_to_ptr.vmem [resolvable:$true] %s17_s15 }
   0x4   :  { %s817_s18 = scalar_lea.hbm %s1027_s1, 64 }
   0x5   :  { %p818_p0 = scmp.ne.s32.totalorder %s1027_s1, %s817_s18  ;;  %p821_p1 = scmp.lt.u32.totalorder %s817_s18, %s1027_s1 }
   0x7   :  { %p823_p2 = pnand %p821_p1, %p818_p0 }
   0x9   :  { %826 = shalt.err (!%p823_p2)
}
   0xa   :  { %s827_s23 = scalar_lea.vmem %s28_s13, 64  ;;  %p832_p4 = scmp.lt.s32.totalorder %s28_s13, %s28_s13 }
   0xb   :  { %p828_p3 = scmp.ne.s32.totalorder %s28_s13, %s827_s23  ;;  %p833_p5 = scmp.lt.s32.totalorder %s827_s23, %s827_s23 }
   0xd   :  { %p834_p6 = por %p833_p5, %p832_p4 }
   0xf   :  { %p835_p7 = pnand %p834_p6, %p828_p3 }
  0x11   :  { %838 = shalt.err (!%p835_p7)
}
  0x12   :  { %30 = dma.hbm_to_vmem [thread:$0]  %s1027_s1, 64, %s28_s13, [#allocation7]  }
  0x13   :  { %s839_s28 = scalar_lea.hbm %s1026_s0, 64 }
  0x14   :  { %p840_p8 = scmp.ne.s32.totalorder %s1026_s0, %s839_s28  ;;  %p843_p9 = scmp.lt.u32.totalorder %s839_s28, %s1026_s0 }
  0x16   :  { %p845_p10 = pnand %p843_p9, %p840_p8 }
  0x18   :  { %848 = shalt.err (!%p845_p10)
}
  0x19   :  { %s849_s6 = scalar_lea.vmem %s18_s15, 64  ;;  %p854_p12 = scmp.lt.s32.totalorder %s18_s15, %s18_s15 }
  0x1a   :  { %p850_p11 = scmp.ne.s32.totalorder %s18_s15, %s849_s6  ;;  %p855_p13 = scmp.lt.s32.totalorder %s849_s6, %s849_s6 }
  0x1c   :  { %p856_p0 = por %p855_p13, %p854_p12 }
  0x1e   :  { %p857_p1 = pnand %p856_p0, %p850_p11 }
  0x20   :  { %860 = shalt.err (!%p857_p1)
}
  0x21   :  { %20 = dma.hbm_to_vmem [thread:$0]  %s1026_s0, 64, %s18_s15, [#allocation4]  }
  0x22   :  { %s913_s8 = smov [#allocation8]   ;;  %s861_s12 = scalar_lea.hbm %s1028_s2, 2944 }
  0x23   :  { %s36_s9 = sshll.u32 %s913_s8, 4  ;;  %p862_p2 = scmp.ne.s32.totalorder %s1028_s2, %s861_s12  ;;  %s37_s9 = int_to_ptr.vmem [resolvable:$true] %s36_s9 }
  0x24   :  { %p865_p3 = scmp.lt.u32.totalorder %s861_s12, %s1028_s2 }
  0x26   :  { %p867_p4 = pnand %p865_p3, %p862_p2 }
  0x28   :  { %870 = shalt.err (!%p867_p4)
}
  0x29   :  { %s871_s18 = scalar_lea.vmem %s37_s9, 2944  ;;  %p876_p6 = scmp.lt.s32.totalorder %s37_s9, %s37_s9 }
  0x2a   :  { %p872_p5 = scmp.ne.s32.totalorder %s37_s9, %s871_s18  ;;  %p877_p7 = scmp.lt.s32.totalorder %s871_s18, %s871_s18 }
  0x2c   :  { %p878_p8 = por %p877_p7, %p876_p6 }
  0x2e   :  { %p879_p9 = pnand %p878_p8, %p872_p5 }
  0x30   :  { %882 = shalt.err (!%p879_p9)
}
  0x31   :  { %s914_s0 = smov 128   ;;  %s915_s15 = smov 8  }
  0x32   :  { %42 = dma.hbm_to_vmem [thread:$0]  %s1028_s2, 2944, %s37_s9, [#allocation7], %s914_s0, %s914_s0, %s915_s15  }
  0x33   :  { %905 = dma.done.wait [#allocation4], 64  }
  0x34   :  { %906 = vsyncadd [#allocation4], 4294967232 }
  0x35   :  { %907 = dma.done.wait [#allocation7], 3008  }
  0x36   :  { %908 = vsyncadd [#allocation7], 4294964288  ;;  %vm52_vm0 = vcmask 130048   ;;  %v916_v0 = vmov 0.0   ;;  %vm56_vm1 = vcmask 125952   ;;  %v62_v1 = vld [vmem:[#allocation8] sm:$0xff] }
  0x37   :  { %53 = vst.msk [vmem:[#allocation2] sm:$0xff] %vm52_vm0, %v916_v0  ;;  %54 = vst.msk [vmem:[#allocation2 + $0x8] sm:$0xff] %vm52_vm0, %v916_v0  ;;  %v63_v2 = vld [vmem:[#allocation8 + $0x8] sm:$0xff]  ;;  %v55_v3 = vld [vmem:[#allocation3] sm:$0xf]  ;;  %s917_s2 = smov 64  }
  0x38   :  { %v756_v4 = vpack.c.bf16 %v63_v2, %v62_v1  ;;  %57 = vst.msk [vmem:[#allocation2] sm:$0xf] %vm56_vm1, %v55_v3  ;;  %v58_v5 = vld [vmem:[#allocation6] sm:$0xf]  ;;  %v152_v6 = vld [vmem:[#allocation8 + $0x10] sm:$0xff]  ;;  %v154_v11 = vld [vmem:[#allocation8 + $0x20] sm:$0xff] }
  0x39   :  { %v153_v7 = vld [vmem:[#allocation8 + $0x18] sm:$0xff]  ;;  %59 = vst.msk [vmem:[#allocation2 + $0x8] sm:$0xf] %vm56_vm1, %v58_v5  ;;  %v155_v12 = vld [vmem:[#allocation8 + $0x28] sm:$0xff]  ;;  %v654_v14 = vld [vmem:[#allocation8 + $0xb2] ss:$0 sm:$0xff] }
  0x3a   :  { %v760_v8 = vpack.c.bf16 %v153_v7, %v152_v6  ;;  %757 = vmatprep.subr.bf16.mxu0 %v756_v4  ;;  %v764_v13 = vpack.c.bf16 %v155_v12, %v154_v11  ;;  %256 = vrot.lane.b32.xlu0 %v654_v14, %s917_s2  ;;  %v648_v15 = vld [vmem:[#allocation8 + $0xb0] ss:$0 sm:$0xff]  ;;  %vm161_vm2 = vcmask 261120   ;;  %v651_v22 = vld [vmem:[#allocation8 + $0xb1] ss:$0 sm:$0xff]  ;;  %v274_v37 = vld [vmem:[#allocation8 + $0x38] sm:$0xff] }
  0x3b   :  { %759 = vmatpush3.bf16.msra.mxu0 %v756_v4  ;;  %v273_v36 = vld [vmem:[#allocation8 + $0x30] sm:$0xff]  ;;  %v275_v38 = vld [vmem:[#allocation8 + $0x40] sm:$0xff]  ;;  %v918_v39 = vmov 0.0|0.0   ;;  %v276_v41 = vld [vmem:[#allocation8 + $0x48] sm:$0xff]  ;;  %vm919_vm3 = vmmov 0   ;;  %s920_s21 = smov 96  }
  0x3c   :  { %761 = vmatprep.subr.bf16.mxu1 %v760_v8  ;;  %768 = vmatprep.subr.bf16.mxu0 %v918_v39  ;;  %v769_v40 = vpack.c.bf16 %v274_v37, %v273_v36  ;;  %v772_v42 = vpack.c.bf16 %v276_v41, %v275_v38  ;;  %v379_v61 = vld [vmem:[#allocation8 + $0x50] sm:$0xff]  ;;  %v380_v62 = vld [vmem:[#allocation8 + $0x58] sm:$0xff]  ;;  %v381_v63 = vld [vmem:[#allocation8 + $0x60] sm:$0xff]  ;;  %s921_s22 = smov [#allocation9]   ;;  %vm630_vm4 = vcmask 60416  }
  0x3d   :  { %763 = vmatpush3.bf16.msra.mxu1 %v760_v8  ;;  %v775_v1 = vpack.c.bf16 %v380_v62, %v379_v61  ;;  %v382_v2 = vld [vmem:[#allocation8 + $0x68] sm:$0xff]  ;;  %v464_v5 = vld [vmem:[#allocation8 + $0x70] sm:$0xff]  ;;  %v465_v6 = vld [vmem:[#allocation8 + $0x78] sm:$0xff]  ;;  %s638_s23 = sshll.u32 %s921_s22, 4  ;;  %s639_s23 = int_to_ptr.vmem [resolvable:$true] %s638_s23 }
  0x3e   :  { %765 = vmatprep.subr.bf16.mxu1 %v764_v13  ;;  %v778_v3 = vpack.c.bf16 %v382_v2, %v381_v63  ;;  %v781_v7 = vpack.c.bf16 %v465_v6, %v464_v5  ;;  %s883_s24 = scalar_lea.vmem %s639_s23, 64  ;;  %p888_p11 = scmp.lt.s32.totalorder %s639_s23, %s639_s23 }
  0x3f   :  { %v60_v9 = vld [vmem:[#allocation2] sm:$0xff]  ;;  %p884_p10 = scmp.ne.s32.totalorder %s639_s23, %s883_s24  ;;  %p889_p12 = scmp.lt.s32.totalorder %s883_s24, %s883_s24 }
  0x40   :  { %698 = vmatprep.mubr.msk.f32.mxu0 %vm52_vm0, %v60_v9  ;;  %v61_v10 = vld [vmem:[#allocation2 + $0x8] sm:$0xff] }
  0x41   :  { %699 = vmatmul.mubr.msk.f32.vlgmr.msra.gmra.mrb[0].mxu0 %vm52_vm0, %v61_v10  ;;  %767 = vmatpush3.bf16.msra.mxu1 %v764_v13  ;;  %p890_p13 = por %p889_p12, %p888_p11 }
  0x42   :  { %720 = vmatprep.mubr.msk.f32.mxu0 %vm919_vm3, %v916_v0  ;;  %774 = vmatprep.subr.bf16.mxu1 %v918_v39 }
  0x43   :  { %770 = vmatpush3.bf16.msra.mxu0 %v769_v40  ;;  %p891_p0 = pnand %p890_p13, %p884_p10 }
  0x44   :  { %771 = vmatprep.subr.bf16.mxu0 %v918_v39 }
  0x47   :  { %773 = vmatpush3.bf16.msra.mxu0 %v772_v42 }
  0x48   :  { %780 = vmatprep.subr.bf16.mxu0 %v918_v39 }
  0xac   :  { %v257_v31 = vpop.permute.xlu0 %256 }
 0x114   :  { %v700_v16 = vpop.f32.mrb[0].mxu0 }
 0x115   :  { %v147_v17 = vadd.f32 %v700_v16, %v648_v15  ;;  %v141_v18 = vpop.f32.mrb[1].mxu0  ;;  %v467_v16 = vld [vmem:[#allocation8 + $0x88] sm:$0xff] }
 0x116   :  { %v142_v19 = vadd.f32 %v648_v15, %v141_v18  ;;  %v466_v15 = vld [vmem:[#allocation8 + $0x80] sm:$0xff]  ;;  %v547_v18 = vld [vmem:[#allocation8 + $0x90] sm:$0xff] }
 0x117   :  { %v151_v21 = vmax.f32 %v147_v17, 0.0  ;;  %v784_v17 = vpack.c.bf16 %v467_v16, %v466_v15 }
 0x118   :  { %v150_v20 = vmax.f32 %v142_v19, 0.0  ;;  %v548_v19 = vld [vmem:[#allocation8 + $0x98] sm:$0xff] }
 0x11a   :  { %709 = vmatprep.mubr.msk.f32.mxu1 %vm161_vm2, %v150_v20  ;;  %v787_v20 = vpack.c.bf16 %v548_v19, %v547_v18 }
 0x11b   :  { %710 = vmatmul.mubr.msk.f32.vlgmr.msra.gmra.mrb[0].mxu1 %vm161_vm2, %v151_v21  ;;  %v658_v21 = vld [vmem:[#allocation8 + $0xb3] ss:$0 sm:$0xff] }
 0x11c   :  { %731 = vmatprep.mubr.msk.f32.mxu1 %vm919_vm3, %v916_v0  ;;  %776 = vmatpush3.bf16.msra.mxu1 %v775_v1 }
 0x11d   :  { %777 = vmatprep.subr.bf16.mxu1 %v918_v39 }
 0x120   :  { %779 = vmatpush3.bf16.msra.mxu1 %v778_v3 }
 0x121   :  { %786 = vmatprep.subr.bf16.mxu1 %v918_v39 }
 0x1ee   :  { %v711_v23 = vpop.f32.mrb[0].mxu1 }
 0x1ef   :  { %v240_v24 = vadd.f32 %v711_v23, %v651_v22  ;;  %v234_v25 = vpop.f32.mrb[1].mxu1 }
 0x1f0   :  { %v235_v26 = vadd.f32 %v651_v22, %v234_v25 }
 0x1f2   :  { %v248_v27 = vadd.f32 %v654_v14, %v235_v26 }
 0x1f4   :  { %v655_v28 = vmul.f32 -1.442695, %v248_v27  ;;  %v550_v27 = vld [vmem:[#allocation8 + $0xa8] sm:$0xff] }
 0x1f6   :  { %803 = vpow2.f32 %v655_v28  ;;  %v660_v28 = vld [vmem:[#allocation8 + $0xb4] ss:$0 sm:$0xff] }
 0x200   :  { %v804_v29 = vpop.eup %803 }
 0x201   :  { %v252_v30 = vadd.f32 1.0, %v804_v29 }
 0x203   :  { %805 = vrcp.f32 %v252_v30 }
 0x20d   :  { %v806_v32 = vpop.eup %805 }
 0x20e   :  { %v259_v33 = vmul.f32 %v806_v32, %v257_v31  ;;  %v266_v44 = vsub.f32 1.0, %v806_v32 }
 0x210   :  { %261 = vrot.lane.b32.xlu0 %v259_v33, %s917_s2  ;;  %v662_v33 = vld [vmem:[#allocation8 + $0xb5] ss:$0 sm:$0xff] }
 0x282   :  { %v262_v34 = vpop.permute.xlu0 %261 }
 0x283   :  { %v264_v35 = vadd.f32 %v262_v34, %v235_v26  ;;  %v549_v26 = vld [vmem:[#allocation8 + $0xa0] sm:$0xff] }
 0x285   :  { %807 = vtanh.f32 %v264_v35 }
 0x28f   :  { %v808_v43 = vpop.eup %807 }
 0x290   :  { %268 = vrot.lane.b32.xlu1 %v808_v43, %s920_s21 }
 0x302   :  { %v269_v45 = vpop.permute.xlu1 %268 }
 0x303   :  { %v271_v46 = vmul.f32 %v269_v45, %v266_v44 }
 0x305   :  { %v272_v47 = vmax.f32 %v271_v46, 0.0 }
 0x307   :  { %278 = vrot.lane.b32.xlu1 %v272_v47, %s920_s21 }
 0x379   :  { %v279_v48 = vpop.permute.xlu1 %278 }
 0x37a   :  { %721 = vmatmul.mubr.msk.f32.vlgmr.msra.gmra.mrb[2].mxu0 %vm161_vm2, %v279_v48 }
 0x37b   :  { %742 = vmatprep.mubr.msk.f32.mxu0 %vm919_vm3, %v916_v0  ;;  %782 = vmatpush3.bf16.msra.mxu0 %v781_v7 }
 0x37c   :  { %783 = vmatprep.subr.bf16.mxu0 %v918_v39 }
 0x37f   :  { %785 = vmatpush3.bf16.msra.mxu0 %v784_v17 }
 0x44d   :  { %v348_v49 = vpop.f32.mrb[2].mxu0 }
 0x44e   :  { %v349_v50 = vadd.f32 %v654_v14, %v348_v49  ;;  %v722_v51 = vpop.f32.mrb[3].mxu0 }
 0x450   :  { %360 = vrot.lane.b32.xlu0 %v349_v50, %s917_s2  ;;  %v352_v52 = vadd.f32 %v349_v50, %v240_v24 }
 0x452   :  { %v657_v53 = vmul.f32 -1.442695, %v352_v52 }
 0x454   :  { %809 = vpow2.f32 %v657_v53 }
 0x45e   :  { %v810_v54 = vpop.eup %809 }
 0x45f   :  { %v356_v55 = vadd.f32 1.0, %v810_v54 }
 0x461   :  { %811 = vrcp.f32 %v356_v55 }
 0x46b   :  { %v812_v56 = vpop.eup %811 }
 0x46c   :  { %v370_v8 = vsub.f32 1.0, %v812_v56  ;;  %v376_v10 = vmul.f32 %v812_v56, %v272_v47 }
 0x4c2   :  { %v361_v57 = vpop.permute.xlu0 %360 }
 0x4c3   :  { %v363_v58 = vmul.f32 %v812_v56, %v361_v57 }
 0x4c5   :  { %365 = vrot.lane.b32.xlu1 %v363_v58, %s917_s2 }
 0x537   :  { %v366_v59 = vpop.permute.xlu1 %365 }
 0x538   :  { %v368_v60 = vadd.f32 %v366_v59, %v240_v24 }
 0x53a   :  { %813 = vtanh.f32 %v368_v60 }
 0x544   :  { %v814_v4 = vpop.eup %813 }
 0x545   :  { %372 = vrot.lane.b32.xlu0 %v814_v4, %s920_s21 }
 0x5b7   :  { %v373_v9 = vpop.permute.xlu0 %372 }
 0x5b8   :  { %v375_v11 = vmul.f32 %v373_v9, %v370_v8 }
 0x5ba   :  { %v377_v12 = vadd.f32 %v376_v10, %v375_v11 }
 0x5bc   :  { %v378_v13 = vmax.f32 %v377_v12, 0.0 }
 0x5be   :  { %389 = vrot.lane.b32.xlu1 %v378_v13, %s920_s21 }
 0x630   :  { %v390_v14 = vpop.permute.xlu1 %389 }
 0x631   :  { %732 = vmatmul.mubr.msk.f32.vlgmr.msra.gmra.mrb[2].mxu1 %vm161_vm2, %v390_v14 }
 0x632   :  { %753 = vmatprep.mubr.msk.f32.mxu1 %vm919_vm3, %v916_v0  ;;  %788 = vmatpush3.bf16.msra.mxu1 %v787_v20  ;;  %v790_v0 = vpack.c.bf16 %v550_v27, %v549_v26 }
 0x633   :  { %789 = vmatprep.subr.bf16.mxu1 %v918_v39 }
 0x636   :  { %791 = vmatpush3.bf16.msra.mxu1 %v790_v0 }
 0x704   :  { %v459_v22 = vpop.f32.mrb[2].mxu1 }
 0x705   :  { %v460_v23 = vadd.f32 %v658_v21, %v459_v22  ;;  %v733_v24 = vpop.f32.mrb[3].mxu1 }
 0x707   :  { %v463_v25 = vmax.f32 %v460_v23, 0.0 }
 0x709   :  { %743 = vmatmul.mubr.msk.f32.vlgmr.msra.gmra.mrb[4].mxu0 %vm161_vm2, %v463_v25 }
 0x7dc   :  { %v542_v29 = vpop.f32.mrb[4].mxu0 }
 0x7dd   :  { %v543_v30 = vadd.f32 %v660_v28, %v542_v29  ;;  %v744_v31 = vpop.f32.mrb[5].mxu0 }
 0x7df   :  { %v546_v32 = vmax.f32 %v543_v30, 0.0 }
 0x7e1   :  { %754 = vmatmul.mubr.msk.f32.vlgmr.msra.gmra.mrb[4].mxu1 %vm161_vm2, %v546_v32 }
 0x8b4   :  { %v625_v34 = vpop.f32.mrb[4].mxu1 }
 0x8b5   :  { %v626_v35 = vadd.f32 %v662_v33, %v625_v34  ;;  %v755_v36 = vpop.f32.mrb[5].mxu1 }
 0x8b7   :  { %815 = vtanh.f32 %v626_v35 }
 0x8c1   :  { %v816_v37 = vpop.eup %815 }
 0x8c2   :  { %631 = vst.msk [vmem:[#allocation9] sm:$0xf] %vm630_vm4, %v816_v37 }
 0x8c3   :  { %894 = shalt.err (!%p891_p0)
}
 0x8c4   :  { %s895_s27 = scalar_lea.hbm %s1029_s3, 64 }
 0x8c5   :  { %p896_p1 = scmp.ne.s32.totalorder %s1029_s3, %s895_s27  ;;  %p899_p2 = scmp.lt.u32.totalorder %s895_s27, %s1029_s3 }
 0x8c7   :  { %p901_p3 = pnand %p899_p2, %p896_p1 }
 0x8c9   :  { %904 = shalt.err (!%p901_p3)
}
 0x8ca   :  { %641 = dma.vmem_to_hbm [thread:$0]  %s639_s23, 64, %s1029_s3, [#allocation5]  }
 0x8cb   :  { %909 = dma.done.wait [#allocation5], 64  }
 0x8cc   :  { %910 = vsyncadd [#allocation5], 4294967232 }
 0x8cd   :  { %645 = vsyncpa [#allocation4], 1 }
 0x8ce   :  { %646 = vsyncpa [#allocation7], 1 }
 0x8cf   :  { %647 = vsyncpa [#allocation5], 1 }

</bundles_post_ra>
